<compile_context>
chip_gen: v7x
topology: tpu7x:2x2x1
jax: 0.10.0
libtpu: 0.0.40
codegen_flags: <defaults>
</compile_context>

<pallas_src>
import functools

import jax
import jax.numpy as jnp
from jax.experimental import pallas as pl
from jax.experimental.pallas import tpu as pltpu


# --------------------------------------------------------------------------- #
# Kernel: one unmasked, lane-dense MXU matmul per batch block.
#   y[b, m*L + l] = sum_{c,s} x[b, c*HW + s] * Q[c*HW + s, m*L + l] + shift[m]
# --------------------------------------------------------------------------- #
def _cam_bn_kernel(x_ref, q_ref, shift_ref, o_ref):
    # x_ref:     (B_blk, C*H*W)      bf16, flattened NCHW rows (1024 lanes)
    # q_ref:     (C*H*W, MIP*(H+W))  bf16, fused pool + conv + BN-scale operator
    # shift_ref: (1, MIP*(H+W))      f32, fused conv-bias + BN shift
    # o_ref:     (B_blk, MIP*(H+W))  f32
    o_ref[...] = (
        jnp.dot(x_ref[...], q_ref[...], preferred_element_type=jnp.float32)
        + shift_ref[...]
    )


# --------------------------------------------------------------------------- #
# Per-generation tuning (block target + whether to prefer an even grid).
# --------------------------------------------------------------------------- #
def _device_tuning():
    kind = ""
    try:
        kind = jax.devices()[0].device_kind.lower()
    except Exception:
        pass
    # 8 MiB x-blocks fit the 32 MiB default scoped-VMEM on v6e/v7x; older
    # parts default to a 16 MiB scoped limit, so stay at 4 MiB there.
    block_bytes = (8 << 20) if ("v6" in kind or "v7" in kind) else (4 << 20)
    two_tensorcores = "v7" in kind
    return block_bytes, two_tensorcores


def _choose_batch_block(n, bytes_per_sample, target_bytes, *,
                        sublane=16, prefer_even_grid=False):
    """Rows of x per grid step (caller pads the batch to a multiple of it)."""
    rup = lambda v, m: -(-v // m) * m
    n_pad = rup(n, sublane)
    rows = target_bytes // max(1, bytes_per_sample)
    rows = max(sublane, (rows // sublane) * sublane)
    if rows >= n_pad:
        # Whole (padded) batch fits in one step.  On 2-TensorCore parts split
        # into two steps when that costs no extra padding.
        if (prefer_even_grid and n_pad >= 4 * sublane
                and n_pad % (2 * sublane) == 0):
            return n_pad // 2
        return n_pad
    if prefer_even_grid:
        steps = -(-n_pad // rows)
        if steps % 2 == 1:
            steps += 1
            rows = max(sublane, rup(-(-n_pad // steps), sublane))
    return rows


# --------------------------------------------------------------------------- #
# One-time constant folding: BN + bias + adaptive pools + 1x1 conv -> Q, shift.
# --------------------------------------------------------------------------- #
def fold_cam_bn_params(conv_w, conv_b, bn_gamma, bn_beta, bn_mean, bn_var,
                       h, w, eps=1e-5, compute_dtype=jnp.bfloat16):
    """Build the fused operator Q (C*H*W, MIP*(H+W)) and shift row once."""
    mip, c = conv_w.shape[0], conv_w.shape[1]
    hw, L = h * w, h + w
    f32 = jnp.float32

    scale = bn_gamma.astype(f32) / jnp.sqrt(bn_var.astype(f32) + eps)       # (MIP,)
    w_folded = conv_w.reshape(mip, c).astype(f32) * scale[:, None]          # (MIP, C)
    shift = (conv_b.astype(f32) - bn_mean.astype(f32)) * scale \
        + bn_beta.astype(f32)                                               # (MIP,)

    # Pooling matrix P: (H*W, H+W); cols 0..H-1 mean over W, cols H.. mean over H.
    s = jnp.arange(hw)
    hs, ws = s // w, s % w
    p_h = (hs[:, None] == jnp.arange(h)[None, :]).astype(f32) / w
    p_w = (ws[:, None] == jnp.arange(w)[None, :]).astype(f32) / h
    pool = jnp.concatenate([p_h, p_w], axis=1)                              # (HW, L)

    q = jnp.einsum("mc,sl->csml", w_folded, pool).reshape(c * hw, mip * L)
    shift_row = jnp.repeat(shift, L).reshape(1, mip * L)                    # (1, MIP*L)
    return q.astype(compute_dtype), shift_row                               # shift stays f32


# --------------------------------------------------------------------------- #
# Jitted per-call path.
# --------------------------------------------------------------------------- #
@functools.partial(
    jax.jit,
    static_argnames=("block_bytes_target", "prefer_even_grid",
                     "single_buffer_consts"))
def _cam_bn_apply(x, q, shift_row, *, block_bytes_target, prefer_even_grid,
                  single_buffer_consts):
    n, c, h, w = x.shape
    hw, L = h * w, h + w
    k_dim = c * hw
    n_out = q.shape[1]
    mip = n_out // L

    # Flatten NCHW into one lane-dense row per sample and downcast to the
    # matmul dtype (bf16) -- halves the dominant HBM stream.
    x_mat = x.reshape(n, k_dim).astype(q.dtype)

    bytes_per_sample = k_dim * jnp.dtype(q.dtype).itemsize
    b_blk = _choose_batch_block(n, bytes_per_sample, block_bytes_target,
                                prefer_even_grid=prefer_even_grid)
    padded_n = -(-n // b_blk) * b_blk
    if padded_n != n:
        x_mat = jnp.pad(x_mat, ((0, padded_n - n), (0, 0)))
    grid = (padded_n // b_blk,)

    def const_spec(shape):
        # Q / shift are DMA'd once (constant index map) -> one buffer suffices.
        if single_buffer_consts:
            return pl.BlockSpec(shape, lambda i: (0, 0),
                                pipeline_mode=pl.Buffered(1))
        return pl.BlockSpec(shape, lambda i: (0, 0))

    out = pl.pallas_call(
        _cam_bn_kernel,
        out_shape=jax.ShapeDtypeStruct((padded_n, n_out), jnp.float32),
        grid=grid,
        in_specs=[
            pl.BlockSpec((b_blk, k_dim), lambda i: (i, 0)),   # x rows (pipelined)
            const_spec((k_dim, n_out)),                       # Q (resident)
            const_spec((1, n_out)),                           # shift row
        ],
        out_specs=pl.BlockSpec((b_blk, n_out), lambda i: (i, 0)),
        compiler_params=pltpu.CompilerParams(
            dimension_semantics=("parallel",)),
    )(x_mat, q, shift_row)

    # (padded_N, MIP*L) -> (N, MIP, H+W, 1)  (torch output layout).
    return out[:n].reshape(n, mip, L, 1)


def cam_bn_apply(x, q, shift_row, block_bytes_target=None):
    default_bytes, two_tc = _device_tuning()
    if block_bytes_target is None:
        block_bytes_target = default_bytes
    kwargs = dict(block_bytes_target=int(block_bytes_target),
                  prefer_even_grid=two_tc)
    try:
        return _cam_bn_apply(x, q, shift_row, single_buffer_consts=True,
                             **kwargs)
    except Exception:
        # Fallback if this jax build rejects pipeline_mode=pl.Buffered(1).
        return _cam_bn_apply(x, q, shift_row, single_buffer_consts=False,
                             **kwargs)


def cam_bn_forward(x, conv_w, conv_b, bn_gamma, bn_beta, bn_mean, bn_var,
                   eps=1e-5):
    """Convenience end-to-end path (folds params, then runs the kernel)."""
    _, _, h, w = x.shape
    q, shift_row = fold_cam_bn_params(conv_w, conv_b, bn_gamma, bn_beta,
                                      bn_mean, bn_var, h, w, eps=eps)
    return cam_bn_apply(x, q, shift_row)


# --------------------------------------------------------------------------- #
# Pure-JAX reference (f32 / HIGHEST), mirrors the PyTorch forward (BN eval).
# --------------------------------------------------------------------------- #
def cam_bn_reference(x, conv_w, conv_b, bn_gamma, bn_beta, bn_mean, bn_var,
                     eps=1e-5):
    n, c, h, w = x.shape
    mip = conv_w.shape[0]
    x_h = jnp.mean(x, axis=3)                        # pool over width  -> (n, c, h)
    x_w = jnp.mean(x, axis=2)                        # pool over height -> (n, c, w)
    y = jnp.concatenate([x_h, x_w], axis=2)          # (n, c, h+w)
    wm = conv_w.reshape(mip, c)
    y = jnp.einsum("mc,ncl->nml", wm, y,
                   precision=jax.lax.Precision.HIGHEST) + conv_b.reshape(1, mip, 1)
    scale = bn_gamma / jnp.sqrt(bn_var + eps)
    y = (y - bn_mean.reshape(1, mip, 1)) * scale.reshape(1, mip, 1) \
        + bn_beta.reshape(1, mip, 1)
    return y[..., None]                              # (n, mip, h+w, 1)


if __name__ == "__main__":
    # Module config: inp=4, reduction=32 -> mip = max(8, 4//32) = 8
    N, C, H, W = 2, 4, 16, 16
    reduction = 32
    MIP = max(8, C // reduction)

    key = jax.random.PRNGKey(0)
    kx, kw, kb, kg, kbe, km, kv = jax.random.split(key, 7)

    x = jax.random.normal(kx, (N, C, H, W), dtype=jnp.float32)

    # Deterministic synthetic parameters (BatchNorm in eval mode).
    conv_w = jax.random.normal(kw, (MIP, C, 1, 1), dtype=jnp.float32) * 0.1
    conv_b = jax.random.normal(kb, (MIP,), dtype=jnp.float32) * 0.1
    bn_gamma = 1.0 + 0.1 * jax.random.normal(kg, (MIP,), dtype=jnp.float32)
    bn_beta = 0.1 * jax.random.normal(kbe, (MIP,), dtype=jnp.float32)
    bn_mean = 0.1 * jax.random.normal(km, (MIP,), dtype=jnp.float32)
    bn_var = 1.0 + 0.1 * jax.random.uniform(kv, (MIP,), dtype=jnp.float32)

    # Weight-only constants are folded ONCE, outside the per-call path.
    q, shift_row = fold_cam_bn_params(conv_w, conv_b, bn_gamma, bn_beta,
                                      bn_mean, bn_var, H, W)
    q = jax.block_until_ready(q)

    out = cam_bn_apply(x, q, shift_row)
    out = jax.block_until_ready(out)

    ref = cam_bn_reference(x, conv_w, conv_b, bn_gamma, bn_beta, bn_mean,
                           bn_var)
    assert out.shape == (N, MIP, H + W, 1), out.shape
    # bf16 operands with f32 accumulation: relaxed tolerance vs f32/HIGHEST ref.
    max_err = float(jnp.max(jnp.abs(out - ref)))
    assert max_err < 1e-2, max_err

    print("KERNEL_OK")
</pallas_src>

<mosaic_0001>
module attributes {stable_mosaic.version = 11 : i64} {
  func.func @_cam_bn_kernel(%arg0: i32, %arg1: memref<16x1024xbf16, #tpu.memory_space<vmem>>, %arg2: memref<1024x256xbf16, #tpu.memory_space<vmem>>, %arg3: memref<1x256xf32, #tpu.memory_space<vmem>>, %arg4: memref<16x256xf32, #tpu.memory_space<vmem>>) attributes {dimension_semantics = [#tpu.dimension_semantics<parallel>], iteration_bounds = array<i64: 1>, scalar_prefetch = 0 : i64, scratch_operands = 0 : i64, tpu.core_type = #tpu.core_type<tc>, window_params = [{transform_indices = @transform_0, window_bounds = array<i64: 16, 1024>}, {pipeline_mode = #tpu.pipeline_mode<synchronous>, transform_indices = @transform_1, window_bounds = array<i64: 1024, 256>}, {pipeline_mode = #tpu.pipeline_mode<synchronous>, transform_indices = @transform_2, window_bounds = array<i64: 1, 256>}, {transform_indices = @transform_3, window_bounds = array<i64: 16, 256>}]} {
    %c0 = arith.constant 0 : index
    %c0_0 = arith.constant 0 : index
    %0 = vector.load %arg1[%c0, %c0_0] : memref<16x1024xbf16, #tpu.memory_space<vmem>>, vector<16x1024xbf16>
    %c0_1 = arith.constant 0 : index
    %c0_2 = arith.constant 0 : index
    %1 = vector.load %arg2[%c0_1, %c0_2] : memref<1024x256xbf16, #tpu.memory_space<vmem>>, vector<1024x256xbf16>
    %cst = arith.constant dense<0.000000e+00> : vector<16x256xf32>
    %2 = tpu.matmul %0, %1, %cst {dimension_numbers = #tpu.dot_dimension_numbers<[1], [0], [0], [1], [0, 0, 1, 1], [], []>} : vector<16x1024xbf16>, vector<1024x256xbf16>, vector<16x256xf32> -> vector<16x256xf32>
    %c0_3 = arith.constant 0 : index
    %c0_4 = arith.constant 0 : index
    %3 = vector.load %arg3[%c0_3, %c0_4] : memref<1x256xf32, #tpu.memory_space<vmem>>, vector<1x256xf32>
    %4 = vector.broadcast %3 : vector<1x256xf32> to vector<16x256xf32>
    %5 = arith.addf %2, %4 : vector<16x256xf32>
    %c0_5 = arith.constant 0 : index
    %c0_6 = arith.constant 0 : index
    %6 = vector.load %arg4[%c0_5, %c0_6] : memref<16x256xf32, #tpu.memory_space<vmem>>, vector<16x256xf32>
    tpu.vector_store %arg4[%c0_5, %c0_6], %5 {strides = array<i32>} : memref<16x256xf32, #tpu.memory_space<vmem>>, vector<16x256xf32>,
    return
  }
  func.func @transform_0(%arg0: i32) -> (i32, i32) {
    %c0_i32 = arith.constant 0 : i32
    %c0_i32_0 = arith.constant 0 : i32
    return %arg0, %c0_i32 : i32, i32
  }
  func.func @transform_1(%arg0: i32) -> (i32, i32) {
    %c0_i32 = arith.constant 0 : i32
    %c0_i32_0 = arith.constant 0 : i32
    %c0_i32_1 = arith.constant 0 : i32
    return %c0_i32, %c0_i32_0 : i32, i32
  }
  func.func @transform_2(%arg0: i32) -> (i32, i32) {
    %c0_i32 = arith.constant 0 : i32
    %c0_i32_0 = arith.constant 0 : i32
    %c0_i32_1 = arith.constant 0 : i32
    return %c0_i32, %c0_i32_0 : i32, i32
  }
  func.func @transform_3(%arg0: i32) -> (i32, i32) {
    %c0_i32 = arith.constant 0 : i32
    %c0_i32_0 = arith.constant 0 : i32
    return %arg0, %c0_i32 : i32, i32
  }
}

module attributes {stable_mosaic.version = 11 : i64} {
  func.func @_cam_bn_kernel(%arg0: i32, %arg1: memref<16x1024xbf16, #tpu.memory_space<vmem>>, %arg2: memref<1024x256xbf16, #tpu.memory_space<vmem>>, %arg3: memref<1x256xf32, #tpu.memory_space<vmem>>, %arg4: memref<16x256xf32, #tpu.memory_space<vmem>>) attributes {dimension_semantics = [#tpu.dimension_semantics<parallel>], iteration_bounds = array<i64: 1>, scalar_prefetch = 0 : i64, scratch_operands = 0 : i64, tpu.core_type = #tpu.core_type<tc>, window_params = [{transform_indices = @transform_0, window_bounds = array<i64: 16, 1024>}, {pipeline_mode = #tpu.pipeline_mode<synchronous>, transform_indices = @transform_1, window_bounds = array<i64: 1024, 256>}, {pipeline_mode = #tpu.pipeline_mode<synchronous>, transform_indices = @transform_2, window_bounds = array<i64: 1, 256>}, {transform_indices = @transform_3, window_bounds = array<i64: 16, 256>}]} {
    %c0 = arith.constant 0 : index
    %c0_0 = arith.constant 0 : index
    %0 = vector.load %arg1[%c0, %c0_0] : memref<16x1024xbf16, #tpu.memory_space<vmem>>, vector<16x1024xbf16>
    %c0_1 = arith.constant 0 : index
    %c0_2 = arith.constant 0 : index
    %1 = vector.load %arg2[%c0_1, %c0_2] : memref<1024x256xbf16, #tpu.memory_space<vmem>>, vector<1024x256xbf16>
    %cst = arith.constant dense<0.000000e+00> : vector<16x256xf32>
    %2 = tpu.matmul %0, %1, %cst {dimension_numbers = #tpu.dot_dimension_numbers<[1], [0], [0], [1], [0, 0, 1, 1], [], []>} : vector<16x1024xbf16>, vector<1024x256xbf16>, vector<16x256xf32> -> vector<16x256xf32>
    %c0_3 = arith.constant 0 : index
    %c0_4 = arith.constant 0 : index
    %3 = vector.load %arg3[%c0_3, %c0_4] : memref<1x256xf32, #tpu.memory_space<vmem>>, vector<1x256xf32>
    %4 = vector.broadcast %3 : vector<1x256xf32> to vector<16x256xf32>
    %5 = arith.addf %2, %4 : vector<16x256xf32>
    %c0_5 = arith.constant 0 : index
    %c0_6 = arith.constant 0 : index
    %6 = vector.load %arg4[%c0_5, %c0_6] : memref<16x256xf32, #tpu.memory_space<vmem>>, vector<16x256xf32>
    tpu.vector_store %arg4[%c0_5, %c0_6], %5 {strides = array<i32>} : memref<16x256xf32, #tpu.memory_space<vmem>>, vector<16x256xf32>,
    return
  }
  func.func @transform_0(%arg0: i32) -> (i32, i32) {
    %c0_i32 = arith.constant 0 : i32
    %c0_i32_0 = arith.constant 0 : i32
    return %arg0, %c0_i32 : i32, i32
  }
  func.func @transform_1(%arg0: i32) -> (i32, i32) {
    %c0_i32 = arith.constant 0 : i32
    %c0_i32_0 = arith.constant 0 : i32
    %c0_i32_1 = arith.constant 0 : i32
    return %c0_i32, %c0_i32_0 : i32, i32
  }
  func.func @transform_2(%arg0: i32) -> (i32, i32) {
    %c0_i32 = arith.constant 0 : i32
    %c0_i32_0 = arith.constant 0 : i32
    %c0_i32_1 = arith.constant 0 : i32
    return %c0_i32, %c0_i32_0 : i32, i32
  }
  func.func @transform_3(%arg0: i32) -> (i32, i32) {
    %c0_i32 = arith.constant 0 : i32
    %c0_i32_0 = arith.constant 0 : i32
    return %arg0, %c0_i32 : i32, i32
  }
}

</mosaic_0001>

<bundles_post_ra>
// kernel: _cam_bn_apply.1
= control target key start
LH: loop header
LB: loop body
LE: loop exit
PB: predicated region body
PF: predicated region fallthrough
CT: control target
= control target key end

     0   :  { %8 = vsyncpa [#allocation3], 0  ;;  %s1408_s12 = smov [#allocation2]   ;;  %s1498_s0 = inlined_call_operand.vmem [shape: bf16[16,1024], index: 0, kind: input, shape index: {}]   ;;  %s1499_s1 = inlined_call_operand.hbm [shape: bf16[1024,256], index: 1, kind: input, shape index: {}]   ;;  %s1500_s2 = inlined_call_operand.vmem [shape: f32[1,256], index: 2, kind: input, shape index: {}]   ;;  %s1501_s3 = inlined_call_operand.vmem [shape: f32[16,256], index: 3, kind: output, shape index: {}]  }
   0x1   :  { %s16_s13 = sshll.u32 %s1408_s12, 4  ;;  %s1384_s16 = scalar_lea.hbm %s1499_s1, 16384  ;;  %s17_s13 = int_to_ptr.vmem [resolvable:$true] %s16_s13 }
   0x2   :  { %p1385_p0 = scmp.ne.s32.totalorder %s1499_s1, %s1384_s16  ;;  %p1388_p1 = scmp.lt.u32.totalorder %s1384_s16, %s1499_s1 }
   0x4   :  { %p1390_p2 = pnand %p1388_p1, %p1385_p0 }
   0x6   :  { %1393 = shalt.err (!%p1390_p2)
}
   0x7   :  { %s1394_s21 = scalar_lea.vmem %s17_s13, 16384  ;;  %p1399_p4 = scmp.lt.s32.totalorder %s17_s13, %s17_s13 }
   0x8   :  { %p1395_p3 = scmp.ne.s32.totalorder %s17_s13, %s1394_s21  ;;  %p1400_p5 = scmp.lt.s32.totalorder %s1394_s21, %s1394_s21 }
   0xa   :  { %p1401_p6 = por %p1400_p5, %p1399_p4 }
   0xc   :  { %p1402_p7 = pnand %p1401_p6, %p1395_p3 }
   0xe   :  { %1405 = shalt.err (!%p1402_p7)
}
   0xf   :  { %s1409_s22 = smov 128   ;;  %s1410_s23 = smov 8  }
  0x10   :  { %22 = dma.hbm_to_vmem [thread:$0]  %s1499_s1, 16384, %s17_s13, [#allocation3], %s1409_s22, %s1409_s22, %s1410_s23  }
  0x11   :  { %1406 = dma.done.wait [#allocation3], 16384  }
  0x12   :  { %1407 = vsyncadd [#allocation3], 4294950912  ;;  %v1192_v0 = vld [vmem:[#allocation2 + $0x4] ss:$8 sps:$4 sm:$0xff]   ;;  %v1196_v2 = vld [vmem:[#allocation2] ss:$8 sps:$4 sm:$0xff]  }
  0x13   :  { %v1194_v1 = vld [vmem:[#allocation2 + $0x204] ss:$8 sps:$4 sm:$0xff]   ;;  %856 = vmatprep.subr.bf16.mxu1 %v1192_v0  ;;  %v1197_v3 = vld [vmem:[#allocation2 + $0x200] ss:$8 sps:$4 sm:$0xff]   ;;  %v1198_v4 = vld [vmem:[#allocation2 + $0x14] ss:$8 sps:$4 sm:$0xff]  }
  0x14   :  { %942 = vmatprep.subr.bf16.mxu0 %v1194_v1  ;;  %857 = vmatpush1.bf16.msra.mxu1 %v1196_v2  ;;  %v1200_v5 = vld [vmem:[#allocation2 + $0x214] ss:$8 sps:$4 sm:$0xff]   ;;  %v1202_v6 = vld [vmem:[#allocation2 + $0x10] ss:$8 sps:$4 sm:$0xff]   ;;  %v1204_v8 = vld [vmem:[#allocation2 + $0x24] ss:$8 sps:$4 sm:$0xff]  }
  0x15   :  { %943 = vmatpush1.bf16.msra.mxu0 %v1197_v3  ;;  %858 = vmatprep.subr.bf16.mxu1 %v1198_v4  ;;  %v1203_v7 = vld [vmem:[#allocation2 + $0x210] ss:$8 sps:$4 sm:$0xff]   ;;  %v1206_v9 = vld [vmem:[#allocation2 + $0x224] ss:$8 sps:$4 sm:$0xff]   ;;  %v1208_v10 = vld [vmem:[#allocation2 + $0x20] ss:$8 sps:$4 sm:$0xff]  }
  0x16   :  { %944 = vmatprep.subr.bf16.mxu0 %v1200_v5  ;;  %v1209_v11 = vld [vmem:[#allocation2 + $0x220] ss:$8 sps:$4 sm:$0xff]   ;;  %v1210_v12 = vld [vmem:[#allocation2 + $0x34] ss:$8 sps:$4 sm:$0xff]   ;;  %v1214_v14 = vld [vmem:[#allocation2 + $0x30] ss:$8 sps:$4 sm:$0xff]  }
  0x17   :  { %v1212_v13 = vld [vmem:[#allocation2 + $0x234] ss:$8 sps:$4 sm:$0xff]   ;;  %v1215_v15 = vld [vmem:[#allocation2 + $0x230] ss:$8 sps:$4 sm:$0xff]   ;;  %v1216_v16 = vld [vmem:[#allocation2 + $0x44] ss:$8 sps:$4 sm:$0xff]  }
  0x18   :  { %859 = vmatpush1.bf16.msra.mxu1 %v1202_v6  ;;  %v1218_v17 = vld [vmem:[#allocation2 + $0x244] ss:$8 sps:$4 sm:$0xff]   ;;  %v1220_v18 = vld [vmem:[#allocation2 + $0x40] ss:$8 sps:$4 sm:$0xff]   ;;  %v1222_v20 = vld [vmem:[#allocation2 + $0x54] ss:$8 sps:$4 sm:$0xff]  }
  0x19   :  { %945 = vmatpush1.bf16.msra.mxu0 %v1203_v7  ;;  %860 = vmatprep.subr.bf16.mxu1 %v1204_v8  ;;  %v1221_v19 = vld [vmem:[#allocation2 + $0x240] ss:$8 sps:$4 sm:$0xff]   ;;  %v1224_v21 = vld [vmem:[#allocation2 + $0x254] ss:$8 sps:$4 sm:$0xff]   ;;  %v1226_v22 = vld [vmem:[#allocation2 + $0x50] ss:$8 sps:$4 sm:$0xff]  }
  0x1a   :  { %946 = vmatprep.subr.bf16.mxu0 %v1206_v9  ;;  %v1227_v23 = vld [vmem:[#allocation2 + $0x250] ss:$8 sps:$4 sm:$0xff]   ;;  %v1228_v24 = vld [vmem:[#allocation2 + $0x64] ss:$8 sps:$4 sm:$0xff]   ;;  %v1232_v26 = vld [vmem:[#allocation2 + $0x60] ss:$8 sps:$4 sm:$0xff]  }
  0x1b   :  { %v1230_v25 = vld [vmem:[#allocation2 + $0x264] ss:$8 sps:$4 sm:$0xff]   ;;  %v1233_v27 = vld [vmem:[#allocation2 + $0x260] ss:$8 sps:$4 sm:$0xff]   ;;  %v1234_v28 = vld [vmem:[#allocation2 + $0x74] ss:$8 sps:$4 sm:$0xff]  }
  0x1c   :  { %861 = vmatpush1.bf16.msra.mxu1 %v1208_v10  ;;  %v1236_v29 = vld [vmem:[#allocation2 + $0x274] ss:$8 sps:$4 sm:$0xff]   ;;  %v1238_v30 = vld [vmem:[#allocation2 + $0x70] ss:$8 sps:$4 sm:$0xff]   ;;  %v1240_v32 = vld [vmem:[#allocation2 + $0x84] ss:$8 sps:$4 sm:$0xff]  }
  0x1d   :  { %947 = vmatpush1.bf16.msra.mxu0 %v1209_v11  ;;  %862 = vmatprep.subr.bf16.mxu1 %v1210_v12  ;;  %v1239_v31 = vld [vmem:[#allocation2 + $0x270] ss:$8 sps:$4 sm:$0xff]   ;;  %v1242_v33 = vld [vmem:[#allocation2 + $0x284] ss:$8 sps:$4 sm:$0xff]   ;;  %v1244_v34 = vld [vmem:[#allocation2 + $0x80] ss:$8 sps:$4 sm:$0xff]  }
  0x1e   :  { %948 = vmatprep.subr.bf16.mxu0 %v1212_v13  ;;  %v1245_v35 = vld [vmem:[#allocation2 + $0x280] ss:$8 sps:$4 sm:$0xff]   ;;  %v1246_v36 = vld [vmem:[#allocation2 + $0x94] ss:$8 sps:$4 sm:$0xff]   ;;  %v1250_v38 = vld [vmem:[#allocation2 + $0x90] ss:$8 sps:$4 sm:$0xff]  }
  0x1f   :  { %v1248_v37 = vld [vmem:[#allocation2 + $0x294] ss:$8 sps:$4 sm:$0xff]   ;;  %v1251_v39 = vld [vmem:[#allocation2 + $0x290] ss:$8 sps:$4 sm:$0xff]   ;;  %v1252_v40 = vld [vmem:[#allocation2 + $0xa4] ss:$8 sps:$4 sm:$0xff]  }
  0x20   :  { %863 = vmatpush1.bf16.msra.mxu1 %v1214_v14  ;;  %v1254_v41 = vld [vmem:[#allocation2 + $0x2a4] ss:$8 sps:$4 sm:$0xff]   ;;  %v1256_v42 = vld [vmem:[#allocation2 + $0xa0] ss:$8 sps:$4 sm:$0xff]   ;;  %v1258_v44 = vld [vmem:[#allocation2 + $0xb4] ss:$8 sps:$4 sm:$0xff]  }
  0x21   :  { %949 = vmatpush1.bf16.msra.mxu0 %v1215_v15  ;;  %864 = vmatprep.subr.bf16.mxu1 %v1216_v16  ;;  %v1257_v43 = vld [vmem:[#allocation2 + $0x2a0] ss:$8 sps:$4 sm:$0xff]   ;;  %v1260_v45 = vld [vmem:[#allocation2 + $0x2b4] ss:$8 sps:$4 sm:$0xff]   ;;  %v1262_v46 = vld [vmem:[#allocation2 + $0xb0] ss:$8 sps:$4 sm:$0xff]  }
  0x22   :  { %950 = vmatprep.subr.bf16.mxu0 %v1218_v17  ;;  %v1263_v47 = vld [vmem:[#allocation2 + $0x2b0] ss:$8 sps:$4 sm:$0xff]   ;;  %v28_v48 = vld [vmem:[%s1498_s0] sm:$0xff]  ;;  %v1270_v58 = vld [vmem:[#allocation2 + $0xd4] ss:$8 sps:$4 sm:$0xff]  }
  0x23   :  { %v32_v49 = vld [vmem:[%s1498_s0 + $0x20] sm:$0xff]  ;;  %v30_v53 = vld [vmem:[%s1498_s0 + $0x10] sm:$0xff] }
  0x24   :  { %865 = vmatpush1.bf16.msra.mxu1 %v1220_v18  ;;  %v1264_v50 = vld [vmem:[#allocation2 + $0xc4] ss:$8 sps:$4 sm:$0xff]   ;;  %v1038_v52 = vcombine.high %v28_v48, %v32_v49  ;;  %v34_v54 = vld [vmem:[%s1498_s0 + $0x30] sm:$0xff]  ;;  %v1268_v56 = vld [vmem:[#allocation2 + $0xc0] ss:$8 sps:$4 sm:$0xff]   ;;  %v1037_v8 = vcombine.low %v28_v48, %v32_v49 }
  0x25   :  { %951 = vmatpush1.bf16.msra.mxu0 %v1221_v19  ;;  %866 = vmatprep.subr.bf16.mxu1 %v1222_v20  ;;  %v1266_v51 = vld [vmem:[#allocation2 + $0x2c4] ss:$8 sps:$4 sm:$0xff]   ;;  %v1042_v55 = vcombine.high %v30_v53, %v34_v54  ;;  %v1269_v57 = vld [vmem:[#allocation2 + $0x2c0] ss:$8 sps:$4 sm:$0xff]   ;;  %v1272_v59 = vld [vmem:[#allocation2 + $0x2d4] ss:$8 sps:$4 sm:$0xff]   ;;  %v1041_v10 = vcombine.low %v30_v53, %v34_v54 }
  0x26   :  { %952 = vmatprep.subr.bf16.mxu0 %v1224_v21  ;;  %888 = vmatprep.mubr.bf16.mxu1 %v1038_v52  ;;  %v1274_v60 = vld [vmem:[#allocation2 + $0xd0] ss:$8 sps:$4 sm:$0xff]   ;;  %v1276_v62 = vld [vmem:[#allocation2 + $0xe4] ss:$8 sps:$4 sm:$0xff]   ;;  %v1280_v0 = vld [vmem:[#allocation2 + $0xe0] ss:$8 sps:$4 sm:$0xff]  }
  0x27   :  { %974 = vmatprep.mubr.bf16.mxu0 %v1042_v55  ;;  %v1275_v61 = vld [vmem:[#allocation2 + $0x2d0] ss:$8 sps:$4 sm:$0xff]   ;;  %v1278_v63 = vld [vmem:[#allocation2 + $0x2e4] ss:$8 sps:$4 sm:$0xff]   ;;  %v1281_v1 = vld [vmem:[#allocation2 + $0x2e0] ss:$8 sps:$4 sm:$0xff]  }
  0x28   :  { %867 = vmatpush1.bf16.msra.mxu1 %v1226_v22  ;;  %v1282_v2 = vld [vmem:[#allocation2 + $0xf4] ss:$8 sps:$4 sm:$0xff]   ;;  %v1286_v4 = vld [vmem:[#allocation2 + $0xf0] ss:$8 sps:$4 sm:$0xff]   ;;  %v1290_v6 = vld [vmem:[#allocation2 + $0x104] ss:$8 sps:$4 sm:$0xff]  }
  0x29   :  { %953 = vmatpush1.bf16.msra.mxu0 %v1227_v23  ;;  %868 = vmatprep.subr.bf16.mxu1 %v1228_v24  ;;  %v1284_v3 = vld [vmem:[#allocation2 + $0x2f4] ss:$8 sps:$4 sm:$0xff]   ;;  %v1287_v5 = vld [vmem:[#allocation2 + $0x2f0] ss:$8 sps:$4 sm:$0xff]   ;;  %v1293_v7 = vld [vmem:[#allocation2 + $0x304] ss:$8 sps:$4 sm:$0xff]  }
  0x2a   :  { %954 = vmatprep.subr.bf16.mxu0 %v1230_v25  ;;  %v1288_v9 = vld [vmem:[#allocation2 + $0x100] ss:$8 sps:$4 sm:$0xff]   ;;  %v1296_v12 = vld [vmem:[#allocation2 + $0x114] ss:$8 sps:$4 sm:$0xff]   ;;  %v1294_v14 = vld [vmem:[#allocation2 + $0x110] ss:$8 sps:$4 sm:$0xff]  }
  0x2b   :  { %v1291_v11 = vld [vmem:[#allocation2 + $0x300] ss:$8 sps:$4 sm:$0xff]   ;;  %v1299_v13 = vld [vmem:[#allocation2 + $0x314] ss:$8 sps:$4 sm:$0xff]   ;;  %v1297_v15 = vld [vmem:[#allocation2 + $0x310] ss:$8 sps:$4 sm:$0xff]  }
  0x2c   :  { %869 = vmatpush1.bf16.msra.mxu1 %v1232_v26  ;;  %v1302_v16 = vld [vmem:[#allocation2 + $0x124] ss:$8 sps:$4 sm:$0xff]   ;;  %v1300_v18 = vld [vmem:[#allocation2 + $0x120] ss:$8 sps:$4 sm:$0xff]   ;;  %v1308_v20 = vld [vmem:[#allocation2 + $0x134] ss:$8 sps:$4 sm:$0xff]  }
  0x2d   :  { %955 = vmatpush1.bf16.msra.mxu0 %v1233_v27  ;;  %870 = vmatprep.subr.bf16.mxu1 %v1234_v28  ;;  %v1305_v17 = vld [vmem:[#allocation2 + $0x324] ss:$8 sps:$4 sm:$0xff]   ;;  %v1303_v19 = vld [vmem:[#allocation2 + $0x320] ss:$8 sps:$4 sm:$0xff]   ;;  %v1311_v21 = vld [vmem:[#allocation2 + $0x334] ss:$8 sps:$4 sm:$0xff]  }
  0x2e   :  { %956 = vmatprep.subr.bf16.mxu0 %v1236_v29  ;;  %v1306_v22 = vld [vmem:[#allocation2 + $0x130] ss:$8 sps:$4 sm:$0xff]   ;;  %v1314_v24 = vld [vmem:[#allocation2 + $0x144] ss:$8 sps:$4 sm:$0xff]   ;;  %v1312_v26 = vld [vmem:[#allocation2 + $0x140] ss:$8 sps:$4 sm:$0xff]  }
  0x2f   :  { %v1309_v23 = vld [vmem:[#allocation2 + $0x330] ss:$8 sps:$4 sm:$0xff]   ;;  %v1317_v25 = vld [vmem:[#allocation2 + $0x344] ss:$8 sps:$4 sm:$0xff]   ;;  %v1315_v27 = vld [vmem:[#allocation2 + $0x340] ss:$8 sps:$4 sm:$0xff]  }
  0x30   :  { %871 = vmatpush1.bf16.msra.mxu1 %v1238_v30  ;;  %v1320_v28 = vld [vmem:[#allocation2 + $0x154] ss:$8 sps:$4 sm:$0xff]   ;;  %v1318_v30 = vld [vmem:[#allocation2 + $0x150] ss:$8 sps:$4 sm:$0xff]   ;;  %v1336_v48 = vld [vmem:[#allocation2 + $0x180] ss:$8 sps:$4 sm:$0xff]  }
  0x31   :  { %957 = vmatpush1.bf16.msra.mxu0 %v1239_v31  ;;  %872 = vmatprep.subr.bf16.mxu1 %v1240_v32  ;;  %v1323_v29 = vld [vmem:[#allocation2 + $0x354] ss:$8 sps:$4 sm:$0xff]   ;;  %v1321_v31 = vld [vmem:[#allocation2 + $0x350] ss:$8 sps:$4 sm:$0xff]   ;;  %v1326_v32 = vld [vmem:[#allocation2 + $0x164] ss:$8 sps:$4 sm:$0xff]  }
  0x32   :  { %958 = vmatprep.subr.bf16.mxu0 %v1242_v33  ;;  %v1329_v33 = vld [vmem:[#allocation2 + $0x364] ss:$8 sps:$4 sm:$0xff]   ;;  %v1339_v49 = vld [vmem:[#allocation2 + $0x380] ss:$8 sps:$4 sm:$0xff]   ;;  %v1342_v52 = vld [vmem:[#allocation2 + $0x190] ss:$8 sps:$4 sm:$0xff]  }
  0x33   :  { %v1345_v53 = vld [vmem:[#allocation2 + $0x390] ss:$8 sps:$4 sm:$0xff]   ;;  %v1350_v54 = vld [vmem:[#allocation2 + $0x1a4] ss:$8 sps:$4 sm:$0xff]  }
  0x34   :  { %873 = vmatpush1.bf16.msra.mxu1 %v1244_v34  ;;  %v1458_v34 = vld [vmem:[%s1498_s0 + $0x8] sm:$0xff] }
  0x35   :  { %959 = vmatpush1.bf16.msra.mxu0 %v1245_v35  ;;  %874 = vmatprep.subr.bf16.mxu1 %v1246_v36  ;;  %v1463_v35 = vld [vmem:[%s1498_s0 + $0x28] sm:$0xff]  ;;  %v1468_v36 = vld [vmem:[%s1498_s0 + $0x18] sm:$0xff] }
  0x36   :  { %960 = vmatprep.subr.bf16.mxu0 %v1248_v37  ;;  %v1473_v37 = vld [vmem:[%s1498_s0 + $0x38] sm:$0xff]  ;;  %v1353_v55 = vld [vmem:[#allocation2 + $0x3a4] ss:$8 sps:$4 sm:$0xff]  }
  0x38   :  { %875 = vmatpush1.bf16.msra.mxu1 %v1250_v38  ;;  %v1324_v38 = vld [vmem:[#allocation2 + $0x160] ss:$8 sps:$4 sm:$0xff]  }
  0x39   :  { %961 = vmatpush1.bf16.msra.mxu0 %v1251_v39  ;;  %876 = vmatprep.subr.bf16.mxu1 %v1252_v40  ;;  %v1327_v39 = vld [vmem:[#allocation2 + $0x360] ss:$8 sps:$4 sm:$0xff]   ;;  %v1040_v40 = vcombine.high %v1458_v34, %v1463_v35 }
  0x3a   :  { %962 = vmatprep.subr.bf16.mxu0 %v1254_v41  ;;  %v1332_v41 = vld [vmem:[#allocation2 + $0x174] ss:$8 sps:$4 sm:$0xff]  }
  0x3c   :  { %877 = vmatpush1.bf16.msra.mxu1 %v1256_v42  ;;  %v1335_v42 = vld [vmem:[#allocation2 + $0x374] ss:$8 sps:$4 sm:$0xff]  }
  0x3d   :  { %963 = vmatpush1.bf16.msra.mxu0 %v1257_v43  ;;  %878 = vmatprep.subr.bf16.mxu1 %v1258_v44  ;;  %v1044_v43 = vcombine.high %v1468_v36, %v1473_v37  ;;  %v1330_v44 = vld [vmem:[#allocation2 + $0x170] ss:$8 sps:$4 sm:$0xff]  }
  0x3e   :  { %964 = vmatprep.subr.bf16.mxu0 %v1260_v45  ;;  %v1333_v45 = vld [vmem:[#allocation2 + $0x370] ss:$8 sps:$4 sm:$0xff]  }
  0x40   :  { %879 = vmatpush1.bf16.msra.mxu1 %v1262_v46  ;;  %v1338_v46 = vld [vmem:[#allocation2 + $0x184] ss:$8 sps:$4 sm:$0xff]  }
  0x41   :  { %965 = vmatpush1.bf16.msra.mxu0 %v1263_v47  ;;  %880 = vmatprep.subr.bf16.mxu1 %v1264_v50  ;;  %v1341_v47 = vld [vmem:[#allocation2 + $0x384] ss:$8 sps:$4 sm:$0xff]   ;;  %v1344_v50 = vld [vmem:[#allocation2 + $0x194] ss:$8 sps:$4 sm:$0xff]  }
  0x42   :  { %966 = vmatprep.subr.bf16.mxu0 %v1266_v51  ;;  %v1347_v51 = vld [vmem:[#allocation2 + $0x394] ss:$8 sps:$4 sm:$0xff]  }
  0x44   :  { %881 = vmatpush1.bf16.msra.mxu1 %v1268_v56  ;;  %v1348_v56 = vld [vmem:[#allocation2 + $0x1a0] ss:$8 sps:$4 sm:$0xff]  }
  0x45   :  { %967 = vmatpush1.bf16.msra.mxu0 %v1269_v57  ;;  %882 = vmatprep.subr.bf16.mxu1 %v1270_v58  ;;  %v1351_v57 = vld [vmem:[#allocation2 + $0x3a0] ss:$8 sps:$4 sm:$0xff]   ;;  %v1356_v58 = vld [vmem:[#allocation2 + $0x1b4] ss:$8 sps:$4 sm:$0xff]  }
  0x46   :  { %968 = vmatprep.subr.bf16.mxu0 %v1272_v59  ;;  %v1359_v59 = vld [vmem:[#allocation2 + $0x3b4] ss:$8 sps:$4 sm:$0xff]  }
  0x48   :  { %883 = vmatpush1.bf16.msra.mxu1 %v1274_v60  ;;  %v1354_v60 = vld [vmem:[#allocation2 + $0x1b0] ss:$8 sps:$4 sm:$0xff]  }
  0x49   :  { %969 = vmatpush1.bf16.msra.mxu0 %v1275_v61  ;;  %884 = vmatprep.subr.bf16.mxu1 %v1276_v62  ;;  %v1357_v61 = vld [vmem:[#allocation2 + $0x3b0] ss:$8 sps:$4 sm:$0xff]   ;;  %v1362_v62 = vld [vmem:[#allocation2 + $0x1c4] ss:$8 sps:$4 sm:$0xff]  }
  0x4a   :  { %970 = vmatprep.subr.bf16.mxu0 %v1278_v63  ;;  %v1365_v63 = vld [vmem:[#allocation2 + $0x3c4] ss:$8 sps:$4 sm:$0xff]  }
  0x4c   :  { %885 = vmatpush1.bf16.msra.mxu1 %v1280_v0  ;;  %v1360_v0 = vld [vmem:[#allocation2 + $0x1c0] ss:$8 sps:$4 sm:$0xff]  }
  0x4d   :  { %971 = vmatpush1.bf16.msra.mxu0 %v1281_v1  ;;  %886 = vmatprep.subr.bf16.mxu1 %v1282_v2  ;;  %v1363_v1 = vld [vmem:[#allocation2 + $0x3c0] ss:$8 sps:$4 sm:$0xff]   ;;  %v1368_v2 = vld [vmem:[#allocation2 + $0x1d4] ss:$8 sps:$4 sm:$0xff]  }
  0x4e   :  { %972 = vmatprep.subr.bf16.mxu0 %v1284_v3  ;;  %v1371_v3 = vld [vmem:[#allocation2 + $0x3d4] ss:$8 sps:$4 sm:$0xff]  }
  0x50   :  { %887 = vmatpush1.bf16.msra.mxu1 %v1286_v4  ;;  %v1366_v4 = vld [vmem:[#allocation2 + $0x1d0] ss:$8 sps:$4 sm:$0xff]  }
  0x51   :  { %973 = vmatpush1.bf16.msra.mxu0 %v1287_v5  ;;  %899 = vmatprep.subr.bf16.mxu1 %v1290_v6  ;;  %v1369_v5 = vld [vmem:[#allocation2 + $0x3d0] ss:$8 sps:$4 sm:$0xff]   ;;  %v1374_v6 = vld [vmem:[#allocation2 + $0x1e4] ss:$8 sps:$4 sm:$0xff]  }
  0x52   :  { %985 = vmatprep.subr.bf16.mxu0 %v1293_v7  ;;  %v1377_v7 = vld [vmem:[#allocation2 + $0x3e4] ss:$8 sps:$4 sm:$0xff]  }
  0x53   :  { %889 = vmatmul.mubr.bf16.vlgmr.msra.gmra.mrb[0].mxu1 %v1037_v8  ;;  %v1372_v8 = vld [vmem:[#allocation2 + $0x1e0] ss:$8 sps:$4 sm:$0xff]  }
  0x54   :  { %975 = vmatmul.mubr.bf16.vlgmr.msra.gmra.mrb[0].mxu0 %v1041_v10  ;;  %900 = vmatpush1.bf16.msra.mxu1 %v1288_v9  ;;  %v1375_v9 = vld [vmem:[#allocation2 + $0x3e0] ss:$8 sps:$4 sm:$0xff]   ;;  %v1380_v10 = vld [vmem:[#allocation2 + $0x1f4] ss:$8 sps:$4 sm:$0xff]  }
  0x55   :  { %986 = vmatpush1.bf16.msra.mxu0 %v1291_v11  ;;  %901 = vmatprep.subr.bf16.mxu1 %v1296_v12  ;;  %v1383_v11 = vld [vmem:[#allocation2 + $0x3f4] ss:$8 sps:$4 sm:$0xff]   ;;  %v1378_v12 = vld [vmem:[#allocation2 + $0x1f0] ss:$8 sps:$4 sm:$0xff]  }
  0x56   :  { %987 = vmatprep.subr.bf16.mxu0 %v1299_v13  ;;  %931 = vmatprep.mubr.bf16.mxu1 %v1040_v40  ;;  %v1381_v13 = vld [vmem:[#allocation2 + $0x3f0] ss:$8 sps:$4 sm:$0xff]  }
  0x57   :  { %1017 = vmatprep.mubr.bf16.mxu0 %v1044_v43 }
  0x58   :  { %902 = vmatpush1.bf16.msra.mxu1 %v1294_v14  ;;  %v1039_v14 = vcombine.low %v1458_v34, %v1463_v35 }
  0x59   :  { %988 = vmatpush1.bf16.msra.mxu0 %v1297_v15  ;;  %903 = vmatprep.subr.bf16.mxu1 %v1302_v16  ;;  %v1043_v15 = vcombine.low %v1468_v36, %v1473_v37  ;;  %v166_v16 = vlaneseq }
  0x5a   :  { %989 = vmatprep.subr.bf16.mxu0 %v1305_v17 }
  0x5b   :  { %v167_v17 = vshrl.u32 %v166_v16, 7 }
  0x5c   :  { %904 = vmatpush1.bf16.msra.mxu1 %v1300_v18 }
  0x5d   :  { %990 = vmatpush1.bf16.msra.mxu0 %v1303_v19  ;;  %905 = vmatprep.subr.bf16.mxu1 %v1308_v20  ;;  %v168_v18 = vsub.s32 0, %v167_v17  ;;  %v164_v19 = vld [vmem:[%s1500_s2] sm:$0x3]  ;;  %v172_v20 = vsub.s32 1, %v167_v17 }
  0x5e   :  { %991 = vmatprep.subr.bf16.mxu0 %v1311_v21 }
  0x5f   :  { %v169_v21 = vrot.slane %v164_v19, %v168_v18 }
  0x60   :  { %906 = vmatpush1.bf16.msra.mxu1 %v1306_v22  ;;  %v173_v22 = vrot.slane %v164_v19, %v172_v20 }
  0x61   :  { %992 = vmatpush1.bf16.msra.mxu0 %v1309_v23  ;;  %907 = vmatprep.subr.bf16.mxu1 %v1314_v24 }
  0x62   :  { %993 = vmatprep.subr.bf16.mxu0 %v1317_v25 }
  0x64   :  { %908 = vmatpush1.bf16.msra.mxu1 %v1312_v26 }
  0x65   :  { %994 = vmatpush1.bf16.msra.mxu0 %v1315_v27  ;;  %909 = vmatprep.subr.bf16.mxu1 %v1320_v28 }
  0x66   :  { %995 = vmatprep.subr.bf16.mxu0 %v1323_v29 }
  0x68   :  { %910 = vmatpush1.bf16.msra.mxu1 %v1318_v30 }
  0x69   :  { %996 = vmatpush1.bf16.msra.mxu0 %v1321_v31  ;;  %911 = vmatprep.subr.bf16.mxu1 %v1326_v32 }
  0x6a   :  { %997 = vmatprep.subr.bf16.mxu0 %v1329_v33 }
  0x6c   :  { %912 = vmatpush1.bf16.msra.mxu1 %v1324_v38 }
  0x6d   :  { %998 = vmatpush1.bf16.msra.mxu0 %v1327_v39  ;;  %913 = vmatprep.subr.bf16.mxu1 %v1332_v41 }
  0x6e   :  { %999 = vmatprep.subr.bf16.mxu0 %v1335_v42 }
  0x70   :  { %914 = vmatpush1.bf16.msra.mxu1 %v1330_v44 }
  0x71   :  { %1000 = vmatpush1.bf16.msra.mxu0 %v1333_v45  ;;  %915 = vmatprep.subr.bf16.mxu1 %v1338_v46 }
  0x72   :  { %1001 = vmatprep.subr.bf16.mxu0 %v1341_v47 }
  0x74   :  { %916 = vmatpush1.bf16.msra.mxu1 %v1336_v48 }
  0x75   :  { %1002 = vmatpush1.bf16.msra.mxu0 %v1339_v49  ;;  %917 = vmatprep.subr.bf16.mxu1 %v1344_v50 }
  0x76   :  { %1003 = vmatprep.subr.bf16.mxu0 %v1347_v51 }
  0x78   :  { %918 = vmatpush1.bf16.msra.mxu1 %v1342_v52 }
  0x79   :  { %1004 = vmatpush1.bf16.msra.mxu0 %v1345_v53  ;;  %919 = vmatprep.subr.bf16.mxu1 %v1350_v54 }
  0x7a   :  { %1005 = vmatprep.subr.bf16.mxu0 %v1353_v55 }
  0x7c   :  { %920 = vmatpush1.bf16.msra.mxu1 %v1348_v56 }
  0x7d   :  { %1006 = vmatpush1.bf16.msra.mxu0 %v1351_v57  ;;  %921 = vmatprep.subr.bf16.mxu1 %v1356_v58 }
  0x7e   :  { %1007 = vmatprep.subr.bf16.mxu0 %v1359_v59 }
  0x80   :  { %922 = vmatpush1.bf16.msra.mxu1 %v1354_v60 }
  0x81   :  { %1008 = vmatpush1.bf16.msra.mxu0 %v1357_v61  ;;  %923 = vmatprep.subr.bf16.mxu1 %v1362_v62 }
  0x82   :  { %1009 = vmatprep.subr.bf16.mxu0 %v1365_v63 }
  0x84   :  { %924 = vmatpush1.bf16.msra.mxu1 %v1360_v0 }
  0x85   :  { %1010 = vmatpush1.bf16.msra.mxu0 %v1363_v1  ;;  %925 = vmatprep.subr.bf16.mxu1 %v1368_v2 }
  0x86   :  { %1011 = vmatprep.subr.bf16.mxu0 %v1371_v3 }
  0x88   :  { %926 = vmatpush1.bf16.msra.mxu1 %v1366_v4 }
  0x89   :  { %1012 = vmatpush1.bf16.msra.mxu0 %v1369_v5  ;;  %927 = vmatprep.subr.bf16.mxu1 %v1374_v6 }
  0x8a   :  { %1013 = vmatprep.subr.bf16.mxu0 %v1377_v7 }
  0x8c   :  { %928 = vmatpush1.bf16.msra.mxu1 %v1372_v8 }
  0x8d   :  { %1014 = vmatpush1.bf16.msra.mxu0 %v1375_v9  ;;  %929 = vmatprep.subr.bf16.mxu1 %v1380_v10 }
  0x8e   :  { %1015 = vmatprep.subr.bf16.mxu0 %v1383_v11 }
  0x90   :  { %930 = vmatpush1.bf16.msra.mxu1 %v1378_v12 }
  0x91   :  { %1016 = vmatpush1.bf16.msra.mxu0 %v1381_v13 }
  0x93   :  { %932 = vmatmul.mubr.bf16.vlgmr.msra.gmra.mrb[0].mxu1 %v1039_v14 }
  0x94   :  { %1018 = vmatmul.mubr.bf16.vlgmr.msra.gmra.mrb[0].mxu0 %v1043_v15 }
 0x166   :  { %v933_v23 = vpop.f32.mrb[0].mxu1 }
 0x167   :  { %v1019_v24 = vpop.f32.mrb[0].mxu0  ;;  %v1173_v25 = vadd.f32 %v933_v23, %v169_v21  ;;  %v935_v26 = vpop.f32.mrb[1].mxu1 }
 0x168   :  { %v1021_v27 = vpop.f32.mrb[1].mxu0  ;;  %v1175_v28 = vadd.f32 %v935_v26, %v173_v22  ;;  %v937_v29 = vpop.f32.mrb[2].mxu1 }
 0x169   :  { %v1023_v30 = vpop.f32.mrb[2].mxu0  ;;  %v1174_v31 = vadd.f32 %v1173_v25, %v1019_v24  ;;  %v1177_v32 = vadd.f32 %v937_v29, %v169_v21  ;;  %v939_v33 = vpop.f32.mrb[3].mxu1 }
 0x16a   :  { %v1025_v34 = vpop.f32.mrb[3].mxu0  ;;  %v1176_v35 = vadd.f32 %v1175_v28, %v1021_v27  ;;  %v1179_v36 = vadd.f32 %v939_v33, %v173_v22 }
 0x16b   :  { %1028 = vst [vmem:[%s1501_s3] sm:$0xff] %v1174_v31  ;;  %v1178_v37 = vadd.f32 %v1177_v32, %v1023_v30 }
 0x16c   :  { %1029 = vst [vmem:[%s1501_s3 + $0x8] sm:$0xff] %v1176_v35  ;;  %v1180_v38 = vadd.f32 %v1179_v36, %v1025_v34 }
 0x16d   :  { %1030 = vst [vmem:[%s1501_s3 + $0x10] sm:$0xff] %v1178_v37 }
 0x16e   :  { %1031 = vst [vmem:[%s1501_s3 + $0x18] sm:$0xff] %v1180_v38 }
 0x16f   :  { %1036 = vsyncpa [#allocation3], 1 }

// kernel: _cam_bn_apply.1
= control target key start
LH: loop header
LB: loop body
LE: loop exit
PB: predicated region body
PF: predicated region fallthrough
CT: control target
= control target key end

     0   :  { %8 = vsyncpa [#allocation3], 0  ;;  %s1408_s12 = smov [#allocation2]   ;;  %s1498_s0 = inlined_call_operand.vmem [shape: bf16[16,1024], index: 0, kind: input, shape index: {}]   ;;  %s1499_s1 = inlined_call_operand.hbm [shape: bf16[1024,256], index: 1, kind: input, shape index: {}]   ;;  %s1500_s2 = inlined_call_operand.vmem [shape: f32[1,256], index: 2, kind: input, shape index: {}]   ;;  %s1501_s3 = inlined_call_operand.vmem [shape: f32[16,256], index: 3, kind: output, shape index: {}]  }
   0x1   :  { %s16_s13 = sshll.u32 %s1408_s12, 4  ;;  %s1384_s16 = scalar_lea.hbm %s1499_s1, 16384  ;;  %s17_s13 = int_to_ptr.vmem [resolvable:$true] %s16_s13 }
   0x2   :  { %p1385_p0 = scmp.ne.s32.totalorder %s1499_s1, %s1384_s16  ;;  %p1388_p1 = scmp.lt.u32.totalorder %s1384_s16, %s1499_s1 }
   0x4   :  { %p1390_p2 = pnand %p1388_p1, %p1385_p0 }
   0x6   :  { %1393 = shalt.err (!%p1390_p2)
}
   0x7   :  { %s1394_s21 = scalar_lea.vmem %s17_s13, 16384  ;;  %p1399_p4 = scmp.lt.s32.totalorder %s17_s13, %s17_s13 }
   0x8   :  { %p1395_p3 = scmp.ne.s32.totalorder %s17_s13, %s1394_s21  ;;  %p1400_p5 = scmp.lt.s32.totalorder %s1394_s21, %s1394_s21 }
   0xa   :  { %p1401_p6 = por %p1400_p5, %p1399_p4 }
   0xc   :  { %p1402_p7 = pnand %p1401_p6, %p1395_p3 }
   0xe   :  { %1405 = shalt.err (!%p1402_p7)
}
   0xf   :  { %s1409_s22 = smov 128   ;;  %s1410_s23 = smov 8  }
  0x10   :  { %22 = dma.hbm_to_vmem [thread:$0]  %s1499_s1, 16384, %s17_s13, [#allocation3], %s1409_s22, %s1409_s22, %s1410_s23  }
  0x11   :  { %1406 = dma.done.wait [#allocation3], 16384  }
  0x12   :  { %1407 = vsyncadd [#allocation3], 4294950912  ;;  %v1192_v0 = vld [vmem:[#allocation2 + $0x4] ss:$8 sps:$4 sm:$0xff]   ;;  %v1196_v2 = vld [vmem:[#allocation2] ss:$8 sps:$4 sm:$0xff]  }
  0x13   :  { %v1194_v1 = vld [vmem:[#allocation2 + $0x204] ss:$8 sps:$4 sm:$0xff]   ;;  %856 = vmatprep.subr.bf16.mxu1 %v1192_v0  ;;  %v1197_v3 = vld [vmem:[#allocation2 + $0x200] ss:$8 sps:$4 sm:$0xff]   ;;  %v1198_v4 = vld [vmem:[#allocation2 + $0x14] ss:$8 sps:$4 sm:$0xff]  }
  0x14   :  { %942 = vmatprep.subr.bf16.mxu0 %v1194_v1  ;;  %857 = vmatpush1.bf16.msra.mxu1 %v1196_v2  ;;  %v1200_v5 = vld [vmem:[#allocation2 + $0x214] ss:$8 sps:$4 sm:$0xff]   ;;  %v1202_v6 = vld [vmem:[#allocation2 + $0x10] ss:$8 sps:$4 sm:$0xff]   ;;  %v1204_v8 = vld [vmem:[#allocation2 + $0x24] ss:$8 sps:$4 sm:$0xff]  }
  0x15   :  { %943 = vmatpush1.bf16.msra.mxu0 %v1197_v3  ;;  %858 = vmatprep.subr.bf16.mxu1 %v1198_v4  ;;  %v1203_v7 = vld [vmem:[#allocation2 + $0x210] ss:$8 sps:$4 sm:$0xff]   ;;  %v1206_v9 = vld [vmem:[#allocation2 + $0x224] ss:$8 sps:$4 sm:$0xff]   ;;  %v1208_v10 = vld [vmem:[#allocation2 + $0x20] ss:$8 sps:$4 sm:$0xff]  }
  0x16   :  { %944 = vmatprep.subr.bf16.mxu0 %v1200_v5  ;;  %v1209_v11 = vld [vmem:[#allocation2 + $0x220] ss:$8 sps:$4 sm:$0xff]   ;;  %v1210_v12 = vld [vmem:[#allocation2 + $0x34] ss:$8 sps:$4 sm:$0xff]   ;;  %v1214_v14 = vld [vmem:[#allocation2 + $0x30] ss:$8 sps:$4 sm:$0xff]  }
  0x17   :  { %v1212_v13 = vld [vmem:[#allocation2 + $0x234] ss:$8 sps:$4 sm:$0xff]   ;;  %v1215_v15 = vld [vmem:[#allocation2 + $0x230] ss:$8 sps:$4 sm:$0xff]   ;;  %v1216_v16 = vld [vmem:[#allocation2 + $0x44] ss:$8 sps:$4 sm:$0xff]  }
  0x18   :  { %859 = vmatpush1.bf16.msra.mxu1 %v1202_v6  ;;  %v1218_v17 = vld [vmem:[#allocation2 + $0x244] ss:$8 sps:$4 sm:$0xff]   ;;  %v1220_v18 = vld [vmem:[#allocation2 + $0x40] ss:$8 sps:$4 sm:$0xff]   ;;  %v1222_v20 = vld [vmem:[#allocation2 + $0x54] ss:$8 sps:$4 sm:$0xff]  }
  0x19   :  { %945 = vmatpush1.bf16.msra.mxu0 %v1203_v7  ;;  %860 = vmatprep.subr.bf16.mxu1 %v1204_v8  ;;  %v1221_v19 = vld [vmem:[#allocation2 + $0x240] ss:$8 sps:$4 sm:$0xff]   ;;  %v1224_v21 = vld [vmem:[#allocation2 + $0x254] ss:$8 sps:$4 sm:$0xff]   ;;  %v1226_v22 = vld [vmem:[#allocation2 + $0x50] ss:$8 sps:$4 sm:$0xff]  }
  0x1a   :  { %946 = vmatprep.subr.bf16.mxu0 %v1206_v9  ;;  %v1227_v23 = vld [vmem:[#allocation2 + $0x250] ss:$8 sps:$4 sm:$0xff]   ;;  %v1228_v24 = vld [vmem:[#allocation2 + $0x64] ss:$8 sps:$4 sm:$0xff]   ;;  %v1232_v26 = vld [vmem:[#allocation2 + $0x60] ss:$8 sps:$4 sm:$0xff]  }
  0x1b   :  { %v1230_v25 = vld [vmem:[#allocation2 + $0x264] ss:$8 sps:$4 sm:$0xff]   ;;  %v1233_v27 = vld [vmem:[#allocation2 + $0x260] ss:$8 sps:$4 sm:$0xff]   ;;  %v1234_v28 = vld [vmem:[#allocation2 + $0x74] ss:$8 sps:$4 sm:$0xff]  }
  0x1c   :  { %861 = vmatpush1.bf16.msra.mxu1 %v1208_v10  ;;  %v1236_v29 = vld [vmem:[#allocation2 + $0x274] ss:$8 sps:$4 sm:$0xff]   ;;  %v1238_v30 = vld [vmem:[#allocation2 + $0x70] ss:$8 sps:$4 sm:$0xff]   ;;  %v1240_v32 = vld [vmem:[#allocation2 + $0x84] ss:$8 sps:$4 sm:$0xff]  }
  0x1d   :  { %947 = vmatpush1.bf16.msra.mxu0 %v1209_v11  ;;  %862 = vmatprep.subr.bf16.mxu1 %v1210_v12  ;;  %v1239_v31 = vld [vmem:[#allocation2 + $0x270] ss:$8 sps:$4 sm:$0xff]   ;;  %v1242_v33 = vld [vmem:[#allocation2 + $0x284] ss:$8 sps:$4 sm:$0xff]   ;;  %v1244_v34 = vld [vmem:[#allocation2 + $0x80] ss:$8 sps:$4 sm:$0xff]  }
  0x1e   :  { %948 = vmatprep.subr.bf16.mxu0 %v1212_v13  ;;  %v1245_v35 = vld [vmem:[#allocation2 + $0x280] ss:$8 sps:$4 sm:$0xff]   ;;  %v1246_v36 = vld [vmem:[#allocation2 + $0x94] ss:$8 sps:$4 sm:$0xff]   ;;  %v1250_v38 = vld [vmem:[#allocation2 + $0x90] ss:$8 sps:$4 sm:$0xff]  }
  0x1f   :  { %v1248_v37 = vld [vmem:[#allocation2 + $0x294] ss:$8 sps:$4 sm:$0xff]   ;;  %v1251_v39 = vld [vmem:[#allocation2 + $0x290] ss:$8 sps:$4 sm:$0xff]   ;;  %v1252_v40 = vld [vmem:[#allocation2 + $0xa4] ss:$8 sps:$4 sm:$0xff]  }
  0x20   :  { %863 = vmatpush1.bf16.msra.mxu1 %v1214_v14  ;;  %v1254_v41 = vld [vmem:[#allocation2 + $0x2a4] ss:$8 sps:$4 sm:$0xff]   ;;  %v1256_v42 = vld [vmem:[#allocation2 + $0xa0] ss:$8 sps:$4 sm:$0xff]   ;;  %v1258_v44 = vld [vmem:[#allocation2 + $0xb4] ss:$8 sps:$4 sm:$0xff]  }
  0x21   :  { %949 = vmatpush1.bf16.msra.mxu0 %v1215_v15  ;;  %864 = vmatprep.subr.bf16.mxu1 %v1216_v16  ;;  %v1257_v43 = vld [vmem:[#allocation2 + $0x2a0] ss:$8 sps:$4 sm:$0xff]   ;;  %v1260_v45 = vld [vmem:[#allocation2 + $0x2b4] ss:$8 sps:$4 sm:$0xff]   ;;  %v1262_v46 = vld [vmem:[#allocation2 + $0xb0] ss:$8 sps:$4 sm:$0xff]  }
  0x22   :  { %950 = vmatprep.subr.bf16.mxu0 %v1218_v17  ;;  %v1263_v47 = vld [vmem:[#allocation2 + $0x2b0] ss:$8 sps:$4 sm:$0xff]   ;;  %v28_v48 = vld [vmem:[%s1498_s0] sm:$0xff]  ;;  %v1270_v58 = vld [vmem:[#allocation2 + $0xd4] ss:$8 sps:$4 sm:$0xff]  }
  0x23   :  { %v32_v49 = vld [vmem:[%s1498_s0 + $0x20] sm:$0xff]  ;;  %v30_v53 = vld [vmem:[%s1498_s0 + $0x10] sm:$0xff] }
  0x24   :  { %865 = vmatpush1.bf16.msra.mxu1 %v1220_v18  ;;  %v1264_v50 = vld [vmem:[#allocation2 + $0xc4] ss:$8 sps:$4 sm:$0xff]   ;;  %v1038_v52 = vcombine.high %v28_v48, %v32_v49  ;;  %v34_v54 = vld [vmem:[%s1498_s0 + $0x30] sm:$0xff]  ;;  %v1268_v56 = vld [vmem:[#allocation2 + $0xc0] ss:$8 sps:$4 sm:$0xff]   ;;  %v1037_v8 = vcombine.low %v28_v48, %v32_v49 }
  0x25   :  { %951 = vmatpush1.bf16.msra.mxu0 %v1221_v19  ;;  %866 = vmatprep.subr.bf16.mxu1 %v1222_v20  ;;  %v1266_v51 = vld [vmem:[#allocation2 + $0x2c4] ss:$8 sps:$4 sm:$0xff]   ;;  %v1042_v55 = vcombine.high %v30_v53, %v34_v54  ;;  %v1269_v57 = vld [vmem:[#allocation2 + $0x2c0] ss:$8 sps:$4 sm:$0xff]   ;;  %v1272_v59 = vld [vmem:[#allocation2 + $0x2d4] ss:$8 sps:$4 sm:$0xff]   ;;  %v1041_v10 = vcombine.low %v30_v53, %v34_v54 }
  0x26   :  { %952 = vmatprep.subr.bf16.mxu0 %v1224_v21  ;;  %888 = vmatprep.mubr.bf16.mxu1 %v1038_v52  ;;  %v1274_v60 = vld [vmem:[#allocation2 + $0xd0] ss:$8 sps:$4 sm:$0xff]   ;;  %v1276_v62 = vld [vmem:[#allocation2 + $0xe4] ss:$8 sps:$4 sm:$0xff]   ;;  %v1280_v0 = vld [vmem:[#allocation2 + $0xe0] ss:$8 sps:$4 sm:$0xff]  }
  0x27   :  { %974 = vmatprep.mubr.bf16.mxu0 %v1042_v55  ;;  %v1275_v61 = vld [vmem:[#allocation2 + $0x2d0] ss:$8 sps:$4 sm:$0xff]   ;;  %v1278_v63 = vld [vmem:[#allocation2 + $0x2e4] ss:$8 sps:$4 sm:$0xff]   ;;  %v1281_v1 = vld [vmem:[#allocation2 + $0x2e0] ss:$8 sps:$4 sm:$0xff]  }
  0x28   :  { %867 = vmatpush1.bf16.msra.mxu1 %v1226_v22  ;;  %v1282_v2 = vld [vmem:[#allocation2 + $0xf4] ss:$8 sps:$4 sm:$0xff]   ;;  %v1286_v4 = vld [vmem:[#allocation2 + $0xf0] ss:$8 sps:$4 sm:$0xff]   ;;  %v1290_v6 = vld [vmem:[#allocation2 + $0x104] ss:$8 sps:$4 sm:$0xff]  }
  0x29   :  { %953 = vmatpush1.bf16.msra.mxu0 %v1227_v23  ;;  %868 = vmatprep.subr.bf16.mxu1 %v1228_v24  ;;  %v1284_v3 = vld [vmem:[#allocation2 + $0x2f4] ss:$8 sps:$4 sm:$0xff]   ;;  %v1287_v5 = vld [vmem:[#allocation2 + $0x2f0] ss:$8 sps:$4 sm:$0xff]   ;;  %v1293_v7 = vld [vmem:[#allocation2 + $0x304] ss:$8 sps:$4 sm:$0xff]  }
  0x2a   :  { %954 = vmatprep.subr.bf16.mxu0 %v1230_v25  ;;  %v1288_v9 = vld [vmem:[#allocation2 + $0x100] ss:$8 sps:$4 sm:$0xff]   ;;  %v1296_v12 = vld [vmem:[#allocation2 + $0x114] ss:$8 sps:$4 sm:$0xff]   ;;  %v1294_v14 = vld [vmem:[#allocation2 + $0x110] ss:$8 sps:$4 sm:$0xff]  }
  0x2b   :  { %v1291_v11 = vld [vmem:[#allocation2 + $0x300] ss:$8 sps:$4 sm:$0xff]   ;;  %v1299_v13 = vld [vmem:[#allocation2 + $0x314] ss:$8 sps:$4 sm:$0xff]   ;;  %v1297_v15 = vld [vmem:[#allocation2 + $0x310] ss:$8 sps:$4 sm:$0xff]  }
  0x2c   :  { %869 = vmatpush1.bf16.msra.mxu1 %v1232_v26  ;;  %v1302_v16 = vld [vmem:[#allocation2 + $0x124] ss:$8 sps:$4 sm:$0xff]   ;;  %v1300_v18 = vld [vmem:[#allocation2 + $0x120] ss:$8 sps:$4 sm:$0xff]   ;;  %v1308_v20 = vld [vmem:[#allocation2 + $0x134] ss:$8 sps:$4 sm:$0xff]  }
  0x2d   :  { %955 = vmatpush1.bf16.msra.mxu0 %v1233_v27  ;;  %870 = vmatprep.subr.bf16.mxu1 %v1234_v28  ;;  %v1305_v17 = vld [vmem:[#allocation2 + $0x324] ss:$8 sps:$4 sm:$0xff]   ;;  %v1303_v19 = vld [vmem:[#allocation2 + $0x320] ss:$8 sps:$4 sm:$0xff]   ;;  %v1311_v21 = vld [vmem:[#allocation2 + $0x334] ss:$8 sps:$4 sm:$0xff]  }
  0x2e   :  { %956 = vmatprep.subr.bf16.mxu0 %v1236_v29  ;;  %v1306_v22 = vld [vmem:[#allocation2 + $0x130] ss:$8 sps:$4 sm:$0xff]   ;;  %v1314_v24 = vld [vmem:[#allocation2 + $0x144] ss:$8 sps:$4 sm:$0xff]   ;;  %v1312_v26 = vld [vmem:[#allocation2 + $0x140] ss:$8 sps:$4 sm:$0xff]  }
  0x2f   :  { %v1309_v23 = vld [vmem:[#allocation2 + $0x330] ss:$8 sps:$4 sm:$0xff]   ;;  %v1317_v25 = vld [vmem:[#allocation2 + $0x344] ss:$8 sps:$4 sm:$0xff]   ;;  %v1315_v27 = vld [vmem:[#allocation2 + $0x340] ss:$8 sps:$4 sm:$0xff]  }
  0x30   :  { %871 = vmatpush1.bf16.msra.mxu1 %v1238_v30  ;;  %v1320_v28 = vld [vmem:[#allocation2 + $0x154] ss:$8 sps:$4 sm:$0xff]   ;;  %v1318_v30 = vld [vmem:[#allocation2 + $0x150] ss:$8 sps:$4 sm:$0xff]   ;;  %v1336_v48 = vld [vmem:[#allocation2 + $0x180] ss:$8 sps:$4 sm:$0xff]  }
  0x31   :  { %957 = vmatpush1.bf16.msra.mxu0 %v1239_v31  ;;  %872 = vmatprep.subr.bf16.mxu1 %v1240_v32  ;;  %v1323_v29 = vld [vmem:[#allocation2 + $0x354] ss:$8 sps:$4 sm:$0xff]   ;;  %v1321_v31 = vld [vmem:[#allocation2 + $0x350] ss:$8 sps:$4 sm:$0xff]   ;;  %v1326_v32 = vld [vmem:[#allocation2 + $0x164] ss:$8 sps:$4 sm:$0xff]  }
  0x32   :  { %958 = vmatprep.subr.bf16.mxu0 %v1242_v33  ;;  %v1329_v33 = vld [vmem:[#allocation2 + $0x364] ss:$8 sps:$4 sm:$0xff]   ;;  %v1339_v49 = vld [vmem:[#allocation2 + $0x380] ss:$8 sps:$4 sm:$0xff]   ;;  %v1342_v52 = vld [vmem:[#allocation2 + $0x190] ss:$8 sps:$4 sm:$0xff]  }
  0x33   :  { %v1345_v53 = vld [vmem:[#allocation2 + $0x390] ss:$8 sps:$4 sm:$0xff]   ;;  %v1350_v54 = vld [vmem:[#allocation2 + $0x1a4] ss:$8 sps:$4 sm:$0xff]  }
  0x34   :  { %873 = vmatpush1.bf16.msra.mxu1 %v1244_v34  ;;  %v1458_v34 = vld [vmem:[%s1498_s0 + $0x8] sm:$0xff] }
  0x35   :  { %959 = vmatpush1.bf16.msra.mxu0 %v1245_v35  ;;  %874 = vmatprep.subr.bf16.mxu1 %v1246_v36  ;;  %v1463_v35 = vld [vmem:[%s1498_s0 + $0x28] sm:$0xff]  ;;  %v1468_v36 = vld [vmem:[%s1498_s0 + $0x18] sm:$0xff] }
  0x36   :  { %960 = vmatprep.subr.bf16.mxu0 %v1248_v37  ;;  %v1473_v37 = vld [vmem:[%s1498_s0 + $0x38] sm:$0xff]  ;;  %v1353_v55 = vld [vmem:[#allocation2 + $0x3a4] ss:$8 sps:$4 sm:$0xff]  }
  0x38   :  { %875 = vmatpush1.bf16.msra.mxu1 %v1250_v38  ;;  %v1324_v38 = vld [vmem:[#allocation2 + $0x160] ss:$8 sps:$4 sm:$0xff]  }
  0x39   :  { %961 = vmatpush1.bf16.msra.mxu0 %v1251_v39  ;;  %876 = vmatprep.subr.bf16.mxu1 %v1252_v40  ;;  %v1327_v39 = vld [vmem:[#allocation2 + $0x360] ss:$8 sps:$4 sm:$0xff]   ;;  %v1040_v40 = vcombine.high %v1458_v34, %v1463_v35 }
  0x3a   :  { %962 = vmatprep.subr.bf16.mxu0 %v1254_v41  ;;  %v1332_v41 = vld [vmem:[#allocation2 + $0x174] ss:$8 sps:$4 sm:$0xff]  }
  0x3c   :  { %877 = vmatpush1.bf16.msra.mxu1 %v1256_v42  ;;  %v1335_v42 = vld [vmem:[#allocation2 + $0x374] ss:$8 sps:$4 sm:$0xff]  }
  0x3d   :  { %963 = vmatpush1.bf16.msra.mxu0 %v1257_v43  ;;  %878 = vmatprep.subr.bf16.mxu1 %v1258_v44  ;;  %v1044_v43 = vcombine.high %v1468_v36, %v1473_v37  ;;  %v1330_v44 = vld [vmem:[#allocation2 + $0x170] ss:$8 sps:$4 sm:$0xff]  }
  0x3e   :  { %964 = vmatprep.subr.bf16.mxu0 %v1260_v45  ;;  %v1333_v45 = vld [vmem:[#allocation2 + $0x370] ss:$8 sps:$4 sm:$0xff]  }
  0x40   :  { %879 = vmatpush1.bf16.msra.mxu1 %v1262_v46  ;;  %v1338_v46 = vld [vmem:[#allocation2 + $0x184] ss:$8 sps:$4 sm:$0xff]  }
  0x41   :  { %965 = vmatpush1.bf16.msra.mxu0 %v1263_v47  ;;  %880 = vmatprep.subr.bf16.mxu1 %v1264_v50  ;;  %v1341_v47 = vld [vmem:[#allocation2 + $0x384] ss:$8 sps:$4 sm:$0xff]   ;;  %v1344_v50 = vld [vmem:[#allocation2 + $0x194] ss:$8 sps:$4 sm:$0xff]  }
  0x42   :  { %966 = vmatprep.subr.bf16.mxu0 %v1266_v51  ;;  %v1347_v51 = vld [vmem:[#allocation2 + $0x394] ss:$8 sps:$4 sm:$0xff]  }
  0x44   :  { %881 = vmatpush1.bf16.msra.mxu1 %v1268_v56  ;;  %v1348_v56 = vld [vmem:[#allocation2 + $0x1a0] ss:$8 sps:$4 sm:$0xff]  }
  0x45   :  { %967 = vmatpush1.bf16.msra.mxu0 %v1269_v57  ;;  %882 = vmatprep.subr.bf16.mxu1 %v1270_v58  ;;  %v1351_v57 = vld [vmem:[#allocation2 + $0x3a0] ss:$8 sps:$4 sm:$0xff]   ;;  %v1356_v58 = vld [vmem:[#allocation2 + $0x1b4] ss:$8 sps:$4 sm:$0xff]  }
  0x46   :  { %968 = vmatprep.subr.bf16.mxu0 %v1272_v59  ;;  %v1359_v59 = vld [vmem:[#allocation2 + $0x3b4] ss:$8 sps:$4 sm:$0xff]  }
  0x48   :  { %883 = vmatpush1.bf16.msra.mxu1 %v1274_v60  ;;  %v1354_v60 = vld [vmem:[#allocation2 + $0x1b0] ss:$8 sps:$4 sm:$0xff]  }
  0x49   :  { %969 = vmatpush1.bf16.msra.mxu0 %v1275_v61  ;;  %884 = vmatprep.subr.bf16.mxu1 %v1276_v62  ;;  %v1357_v61 = vld [vmem:[#allocation2 + $0x3b0] ss:$8 sps:$4 sm:$0xff]   ;;  %v1362_v62 = vld [vmem:[#allocation2 + $0x1c4] ss:$8 sps:$4 sm:$0xff]  }
  0x4a   :  { %970 = vmatprep.subr.bf16.mxu0 %v1278_v63  ;;  %v1365_v63 = vld [vmem:[#allocation2 + $0x3c4] ss:$8 sps:$4 sm:$0xff]  }
  0x4c   :  { %885 = vmatpush1.bf16.msra.mxu1 %v1280_v0  ;;  %v1360_v0 = vld [vmem:[#allocation2 + $0x1c0] ss:$8 sps:$4 sm:$0xff]  }
  0x4d   :  { %971 = vmatpush1.bf16.msra.mxu0 %v1281_v1  ;;  %886 = vmatprep.subr.bf16.mxu1 %v1282_v2  ;;  %v1363_v1 = vld [vmem:[#allocation2 + $0x3c0] ss:$8 sps:$4 sm:$0xff]   ;;  %v1368_v2 = vld [vmem:[#allocation2 + $0x1d4] ss:$8 sps:$4 sm:$0xff]  }
  0x4e   :  { %972 = vmatprep.subr.bf16.mxu0 %v1284_v3  ;;  %v1371_v3 = vld [vmem:[#allocation2 + $0x3d4] ss:$8 sps:$4 sm:$0xff]  }
  0x50   :  { %887 = vmatpush1.bf16.msra.mxu1 %v1286_v4  ;;  %v1366_v4 = vld [vmem:[#allocation2 + $0x1d0] ss:$8 sps:$4 sm:$0xff]  }
  0x51   :  { %973 = vmatpush1.bf16.msra.mxu0 %v1287_v5  ;;  %899 = vmatprep.subr.bf16.mxu1 %v1290_v6  ;;  %v1369_v5 = vld [vmem:[#allocation2 + $0x3d0] ss:$8 sps:$4 sm:$0xff]   ;;  %v1374_v6 = vld [vmem:[#allocation2 + $0x1e4] ss:$8 sps:$4 sm:$0xff]  }
  0x52   :  { %985 = vmatprep.subr.bf16.mxu0 %v1293_v7  ;;  %v1377_v7 = vld [vmem:[#allocation2 + $0x3e4] ss:$8 sps:$4 sm:$0xff]  }
  0x53   :  { %889 = vmatmul.mubr.bf16.vlgmr.msra.gmra.mrb[0].mxu1 %v1037_v8  ;;  %v1372_v8 = vld [vmem:[#allocation2 + $0x1e0] ss:$8 sps:$4 sm:$0xff]  }
  0x54   :  { %975 = vmatmul.mubr.bf16.vlgmr.msra.gmra.mrb[0].mxu0 %v1041_v10  ;;  %900 = vmatpush1.bf16.msra.mxu1 %v1288_v9  ;;  %v1375_v9 = vld [vmem:[#allocation2 + $0x3e0] ss:$8 sps:$4 sm:$0xff]   ;;  %v1380_v10 = vld [vmem:[#allocation2 + $0x1f4] ss:$8 sps:$4 sm:$0xff]  }
  0x55   :  { %986 = vmatpush1.bf16.msra.mxu0 %v1291_v11  ;;  %901 = vmatprep.subr.bf16.mxu1 %v1296_v12  ;;  %v1383_v11 = vld [vmem:[#allocation2 + $0x3f4] ss:$8 sps:$4 sm:$0xff]   ;;  %v1378_v12 = vld [vmem:[#allocation2 + $0x1f0] ss:$8 sps:$4 sm:$0xff]  }
  0x56   :  { %987 = vmatprep.subr.bf16.mxu0 %v1299_v13  ;;  %931 = vmatprep.mubr.bf16.mxu1 %v1040_v40  ;;  %v1381_v13 = vld [vmem:[#allocation2 + $0x3f0] ss:$8 sps:$4 sm:$0xff]  }
  0x57   :  { %1017 = vmatprep.mubr.bf16.mxu0 %v1044_v43 }
  0x58   :  { %902 = vmatpush1.bf16.msra.mxu1 %v1294_v14  ;;  %v1039_v14 = vcombine.low %v1458_v34, %v1463_v35 }
  0x59   :  { %988 = vmatpush1.bf16.msra.mxu0 %v1297_v15  ;;  %903 = vmatprep.subr.bf16.mxu1 %v1302_v16  ;;  %v1043_v15 = vcombine.low %v1468_v36, %v1473_v37  ;;  %v166_v16 = vlaneseq }
  0x5a   :  { %989 = vmatprep.subr.bf16.mxu0 %v1305_v17 }
  0x5b   :  { %v167_v17 = vshrl.u32 %v166_v16, 7 }
  0x5c   :  { %904 = vmatpush1.bf16.msra.mxu1 %v1300_v18 }
  0x5d   :  { %990 = vmatpush1.bf16.msra.mxu0 %v1303_v19  ;;  %905 = vmatprep.subr.bf16.mxu1 %v1308_v20  ;;  %v168_v18 = vsub.s32 0, %v167_v17  ;;  %v164_v19 = vld [vmem:[%s1500_s2] sm:$0x3]  ;;  %v172_v20 = vsub.s32 1, %v167_v17 }
  0x5e   :  { %991 = vmatprep.subr.bf16.mxu0 %v1311_v21 }
  0x5f   :  { %v169_v21 = vrot.slane %v164_v19, %v168_v18 }
  0x60   :  { %906 = vmatpush1.bf16.msra.mxu1 %v1306_v22  ;;  %v173_v22 = vrot.slane %v164_v19, %v172_v20 }
  0x61   :  { %992 = vmatpush1.bf16.msra.mxu0 %v1309_v23  ;;  %907 = vmatprep.subr.bf16.mxu1 %v1314_v24 }
  0x62   :  { %993 = vmatprep.subr.bf16.mxu0 %v1317_v25 }
  0x64   :  { %908 = vmatpush1.bf16.msra.mxu1 %v1312_v26 }
  0x65   :  { %994 = vmatpush1.bf16.msra.mxu0 %v1315_v27  ;;  %909 = vmatprep.subr.bf16.mxu1 %v1320_v28 }
  0x66   :  { %995 = vmatprep.subr.bf16.mxu0 %v1323_v29 }
  0x68   :  { %910 = vmatpush1.bf16.msra.mxu1 %v1318_v30 }
  0x69   :  { %996 = vmatpush1.bf16.msra.mxu0 %v1321_v31  ;;  %911 = vmatprep.subr.bf16.mxu1 %v1326_v32 }
  0x6a   :  { %997 = vmatprep.subr.bf16.mxu0 %v1329_v33 }
  0x6c   :  { %912 = vmatpush1.bf16.msra.mxu1 %v1324_v38 }
  0x6d   :  { %998 = vmatpush1.bf16.msra.mxu0 %v1327_v39  ;;  %913 = vmatprep.subr.bf16.mxu1 %v1332_v41 }
  0x6e   :  { %999 = vmatprep.subr.bf16.mxu0 %v1335_v42 }
  0x70   :  { %914 = vmatpush1.bf16.msra.mxu1 %v1330_v44 }
  0x71   :  { %1000 = vmatpush1.bf16.msra.mxu0 %v1333_v45  ;;  %915 = vmatprep.subr.bf16.mxu1 %v1338_v46 }
  0x72   :  { %1001 = vmatprep.subr.bf16.mxu0 %v1341_v47 }
  0x74   :  { %916 = vmatpush1.bf16.msra.mxu1 %v1336_v48 }
  0x75   :  { %1002 = vmatpush1.bf16.msra.mxu0 %v1339_v49  ;;  %917 = vmatprep.subr.bf16.mxu1 %v1344_v50 }
  0x76   :  { %1003 = vmatprep.subr.bf16.mxu0 %v1347_v51 }
  0x78   :  { %918 = vmatpush1.bf16.msra.mxu1 %v1342_v52 }
  0x79   :  { %1004 = vmatpush1.bf16.msra.mxu0 %v1345_v53  ;;  %919 = vmatprep.subr.bf16.mxu1 %v1350_v54 }
  0x7a   :  { %1005 = vmatprep.subr.bf16.mxu0 %v1353_v55 }
  0x7c   :  { %920 = vmatpush1.bf16.msra.mxu1 %v1348_v56 }
  0x7d   :  { %1006 = vmatpush1.bf16.msra.mxu0 %v1351_v57  ;;  %921 = vmatprep.subr.bf16.mxu1 %v1356_v58 }
  0x7e   :  { %1007 = vmatprep.subr.bf16.mxu0 %v1359_v59 }
  0x80   :  { %922 = vmatpush1.bf16.msra.mxu1 %v1354_v60 }
  0x81   :  { %1008 = vmatpush1.bf16.msra.mxu0 %v1357_v61  ;;  %923 = vmatprep.subr.bf16.mxu1 %v1362_v62 }
  0x82   :  { %1009 = vmatprep.subr.bf16.mxu0 %v1365_v63 }
  0x84   :  { %924 = vmatpush1.bf16.msra.mxu1 %v1360_v0 }
  0x85   :  { %1010 = vmatpush1.bf16.msra.mxu0 %v1363_v1  ;;  %925 = vmatprep.subr.bf16.mxu1 %v1368_v2 }
  0x86   :  { %1011 = vmatprep.subr.bf16.mxu0 %v1371_v3 }
  0x88   :  { %926 = vmatpush1.bf16.msra.mxu1 %v1366_v4 }
  0x89   :  { %1012 = vmatpush1.bf16.msra.mxu0 %v1369_v5  ;;  %927 = vmatprep.subr.bf16.mxu1 %v1374_v6 }
  0x8a   :  { %1013 = vmatprep.subr.bf16.mxu0 %v1377_v7 }
  0x8c   :  { %928 = vmatpush1.bf16.msra.mxu1 %v1372_v8 }
  0x8d   :  { %1014 = vmatpush1.bf16.msra.mxu0 %v1375_v9  ;;  %929 = vmatprep.subr.bf16.mxu1 %v1380_v10 }
  0x8e   :  { %1015 = vmatprep.subr.bf16.mxu0 %v1383_v11 }
  0x90   :  { %930 = vmatpush1.bf16.msra.mxu1 %v1378_v12 }
  0x91   :  { %1016 = vmatpush1.bf16.msra.mxu0 %v1381_v13 }
  0x93   :  { %932 = vmatmul.mubr.bf16.vlgmr.msra.gmra.mrb[0].mxu1 %v1039_v14 }
  0x94   :  { %1018 = vmatmul.mubr.bf16.vlgmr.msra.gmra.mrb[0].mxu0 %v1043_v15 }
 0x166   :  { %v933_v23 = vpop.f32.mrb[0].mxu1 }
 0x167   :  { %v1019_v24 = vpop.f32.mrb[0].mxu0  ;;  %v1173_v25 = vadd.f32 %v933_v23, %v169_v21  ;;  %v935_v26 = vpop.f32.mrb[1].mxu1 }
 0x168   :  { %v1021_v27 = vpop.f32.mrb[1].mxu0  ;;  %v1175_v28 = vadd.f32 %v935_v26, %v173_v22  ;;  %v937_v29 = vpop.f32.mrb[2].mxu1 }
 0x169   :  { %v1023_v30 = vpop.f32.mrb[2].mxu0  ;;  %v1174_v31 = vadd.f32 %v1173_v25, %v1019_v24  ;;  %v1177_v32 = vadd.f32 %v937_v29, %v169_v21  ;;  %v939_v33 = vpop.f32.mrb[3].mxu1 }
 0x16a   :  { %v1025_v34 = vpop.f32.mrb[3].mxu0  ;;  %v1176_v35 = vadd.f32 %v1175_v28, %v1021_v27  ;;  %v1179_v36 = vadd.f32 %v939_v33, %v173_v22 }
 0x16b   :  { %1028 = vst [vmem:[%s1501_s3] sm:$0xff] %v1174_v31  ;;  %v1178_v37 = vadd.f32 %v1177_v32, %v1023_v30 }
 0x16c   :  { %1029 = vst [vmem:[%s1501_s3 + $0x8] sm:$0xff] %v1176_v35  ;;  %v1180_v38 = vadd.f32 %v1179_v36, %v1025_v34 }
 0x16d   :  { %1030 = vst [vmem:[%s1501_s3 + $0x10] sm:$0xff] %v1178_v37 }
 0x16e   :  { %1031 = vst [vmem:[%s1501_s3 + $0x18] sm:$0xff] %v1180_v38 }
 0x16f   :  { %1036 = vsyncpa [#allocation3], 1 }

</bundles_post_ra>
